<compile_context>
chip_gen: v7x
topology: tpu7x:2x2x1
jax: 0.10.0
libtpu: 0.0.40
codegen_flags: <defaults>
</compile_context>

<pallas_src>
import functools

import jax
import jax.numpy as jnp
from jax.experimental import pallas as pl
from jax.experimental.pallas import tpu as pltpu

_INV_SQRT2 = 0.7071067811865476


# --------------------------------------------------------------------------
# Hardware / tile selection helpers
# --------------------------------------------------------------------------
def _tpu_hw_info():
    """(vmem_capacity_bytes, is_v5e_or_older, is_v7x) -- best effort, safe fallbacks."""
    kind = ""
    try:
        kind = jax.devices()[0].device_kind.lower()
    except Exception:
        pass
    is_v7 = "v7" in kind
    is_v5e_or_older = any(t in kind for t in ("v2", "v3", "v4", "v5"))
    vmem = 64 * 1024 * 1024 if is_v7 else 128 * 1024 * 1024
    try:
        info = pltpu.get_tpu_info()
        vmem = int(getattr(info, "vmem_capacity_bytes", vmem))
    except Exception:
        pass
    return vmem, is_v5e_or_older, is_v7


def _pick_tile_h(hidden, desired, granularity):
    """Largest hidden-block width <= desired.

    Preference: (a) full hidden if it already fits the request, (b) an exact
    divisor of `hidden` that is a multiple of `granularity` (no masking),
    (c) an exact divisor that is a multiple of 128, (d) a 128-multiple width
    with a masked ragged last block.
    """
    if hidden <= desired:
        return hidden
    cand = (desired // granularity) * granularity
    while cand >= granularity:
        if hidden % cand == 0:
            return cand
        cand -= granularity
    cand = (desired // 128) * 128
    while cand >= 128:
        if hidden % cand == 0:
            return cand
        cand -= 128
    cand = (desired // 128) * 128
    return cand if cand >= 128 else hidden


# --------------------------------------------------------------------------
# Kernels
# --------------------------------------------------------------------------
def _gelu(h, approximate):
    if approximate:
        # tanh form -> EUP transcendental slot (near-free under the MXU).
        return jax.nn.gelu(h, approximate=True)
    # Exact erf form == torch.nn.GELU() default.
    return 0.5 * h * (1.0 + jax.lax.erf(h * _INV_SQRT2))


def _ffn_resident_kernel(x_ref, w1_ref, b1_ref, w2_ref, b2_ref, o_ref, *,
                         approximate_gelu):
    """Weights VMEM-resident: single grid axis over token tiles, no accumulator."""
    h = jnp.dot(x_ref[...], w1_ref[...], preferred_element_type=jnp.float32)
    h = _gelu(h + b1_ref[...].astype(jnp.float32), approximate_gelu)
    out = jnp.dot(h.astype(w2_ref.dtype), w2_ref[...],
                  preferred_element_type=jnp.float32)
    o_ref[...] = (out + b2_ref[...].astype(jnp.float32)).astype(o_ref.dtype)


def _ffn_streaming_kernel(x_ref, w1_ref, b1_ref, w2_ref, b2_ref, o_ref, acc_ref, *,
                          approximate_gelu, th, hidden):
    """Hidden axis streamed in blocks; partial products accumulated in f32 VMEM."""
    h_idx = pl.program_id(1)

    @pl.when(h_idx == 0)
    def _():
        acc_ref[...] = jnp.zeros_like(acc_ref)

    # Linear 1, one hidden block: (TM, dim) @ (dim, TH), f32 accumulate on MXU.
    h = jnp.dot(x_ref[...], w1_ref[...], preferred_element_type=jnp.float32)
    h = _gelu(h + b1_ref[...].astype(jnp.float32), approximate_gelu)

    if hidden % th != 0:
        # Ragged last hidden block: zero out-of-range activation columns so the
        # (garbage-padded) extra w2 rows contribute nothing to the accumulation.
        col = h_idx * th + jax.lax.broadcasted_iota(jnp.int32, (1, th), 1)
        h = jnp.where(col < hidden, h, 0.0)

    # Linear 2 partial product over this hidden block, accumulated in f32.
    acc_ref[...] += jnp.dot(h.astype(w2_ref.dtype), w2_ref[...],
                            preferred_element_type=jnp.float32)

    @pl.when(h_idx == pl.num_programs(1) - 1)
    def _():
        o_ref[...] = (acc_ref[...] + b2_ref[...].astype(jnp.float32)
                      ).astype(o_ref.dtype)


# --------------------------------------------------------------------------
# Wrapper
# --------------------------------------------------------------------------
def feedforward_pallas(x, w1, b1, w2, b2, *, tile_m=None, tile_h=None,
                       approximate_gelu=None, weights_resident=None):
    """Linear(dim->hidden) -> GELU -> Linear(hidden->dim).

    x: (..., dim); w1: (dim, hidden); b1: (hidden,); w2: (hidden, dim); b2: (dim,).
    Returns same shape/dtype as x. Best performance when dim/hidden are
    multiples of 128 (lane-dense) and weights are bf16.
    """
    orig_shape = x.shape
    dim = int(orig_shape[-1])
    hidden = int(w1.shape[1])

    x2d = x.reshape(-1, dim)
    n_tok = int(x2d.shape[0])

    vmem_cap, is_v5e, is_v7 = _tpu_hw_info()
    vmem_limit = int(0.85 * vmem_cap)   # ~54 MiB on v7x, ~109 MiB on v5e/v6e
    vmem_budget = int(0.70 * vmem_cap)  # tile-selection budget (compiler-scratch slop)

    if approximate_gelu is None:
        # v5e: route GELU to the EUP (tanh/exp); the exact-erf polynomial would
        # land on the f32-only VALU, which is the likely binding slot there.
        approximate_gelu = bool(is_v5e)

    w_itemsize = w1.dtype.itemsize
    x_itemsize = x.dtype.itemsize
    o_itemsize = x.dtype.itemsize

    def step_vmem(tm_, th_, resident_):
        xb = 2 * tm_ * dim * x_itemsize                 # double-buffered x tile
        ob = 2 * tm_ * dim * o_itemsize                 # double-buffered out tile
        wb = 2 * (dim * th_ + th_ * dim) * w_itemsize   # w1 + w2 blocks
        bb = 2 * 8 * (th_ + dim) * w_itemsize           # bias blocks (sublane-padded)
        hb = tm_ * th_ * (4 + w_itemsize)               # f32 GELU intermediate + cast
        acc = 0 if resident_ else tm_ * dim * 4         # f32 accumulator scratch
        return xb + ob + wb + bb + hb + acc

    # --- token tile -------------------------------------------------------
    if tile_m is None:
        # Streaming-regime arithmetic intensity ~ 2*tile_m/itemsize flop per weight
        # byte; v6e needs ~640 flop/B (bf16) -> 1024; v5e/v7x hit roofline near 512.
        tile_m = 512 if (is_v7 or is_v5e) else 1024
    tile_m = max(8, (int(tile_m) // 8) * 8)
    tm = n_tok if n_tok <= tile_m else tile_m

    # --- weight-resident fast path -----------------------------------------
    if weights_resident is None:
        resident = False
        tm_try = tm
        while True:
            if step_vmem(tm_try, hidden, True) <= vmem_budget:
                resident, tm = True, tm_try
                break
            if tm_try <= 256:
                break
            tm_try = max(256, (tm_try // 2 // 8) * 8)
    else:
        resident = bool(weights_resident)

    if resident:
        th = hidden
    else:
        granularity = 128 if is_v5e else 256   # 128 loses nothing on v5e's 4x128 MXU
        if tile_h is None:
            tile_h = 128 if is_v5e else 512    # >=512 keeps w1 per-row DMA >=1 KiB (bf16)
        th = _pick_tile_h(hidden, int(tile_h), granularity)
        # Shrink tiles until the streaming working set fits the VMEM budget.
        while tm > 128 and step_vmem(tm, th, False) > vmem_budget:
            tm = max(128, (tm // 2 // 8) * 8)
        while step_vmem(tm, th, False) > vmem_budget:
            smaller = _pick_tile_h(hidden, max(granularity, th // 2), granularity)
            if smaller >= th:
                break  # TODO(synk): also tile `dim` for pathologically wide models
            th = smaller

    grid_m = pl.cdiv(n_tok, tm)
    # v7x has 2 TensorCores: make sure the "parallel" token axis has >= 2 blocks.
    if is_v7 and grid_m == 1 and n_tok >= 16:
        tm = max(8, ((pl.cdiv(n_tok, 2) + 7) // 8) * 8)
        grid_m = pl.cdiv(n_tok, tm)

    grid_h = pl.cdiv(hidden, th)

    b1_2d = b1.reshape(1, hidden)
    b2_2d = b2.reshape(1, dim)

    weight_bytes = (w1.size + w2.size + b1.size + b2.size) * w_itemsize
    cost = pl.CostEstimate(
        flops=4 * n_tok * dim * hidden,             # two matmuls
        transcendentals=n_tok * hidden,             # one erf/tanh per hidden act
        bytes_accessed=int(x2d.size * x_itemsize + n_tok * dim * o_itemsize
                           + (1 if resident else grid_m) * weight_bytes),
    )

    if resident:
        grid = (grid_m,)
        in_specs = [
            pl.BlockSpec((tm, dim), lambda i: (i, 0)),        # x token tile
            pl.BlockSpec((dim, hidden), lambda i: (0, 0)),    # w1 (VMEM-resident)
            pl.BlockSpec((1, hidden), lambda i: (0, 0)),      # b1
            pl.BlockSpec((hidden, dim), lambda i: (0, 0)),    # w2 (VMEM-resident)
            pl.BlockSpec((1, dim), lambda i: (0, 0)),         # b2
        ]
        out_specs = pl.BlockSpec((tm, dim), lambda i: (i, 0))
        scratch_shapes = ()
        kernel = functools.partial(_ffn_resident_kernel,
                                   approximate_gelu=approximate_gelu)
        dim_sem = ("parallel",)
    else:
        grid = (grid_m, grid_h)
        in_specs = [
            pl.BlockSpec((tm, dim), lambda i, h: (i, 0)),     # x token tile
            pl.BlockSpec((dim, th), lambda i, h: (0, h)),     # w1 hidden block
            pl.BlockSpec((1, th), lambda i, h: (0, h)),       # b1 hidden block
            pl.BlockSpec((th, dim), lambda i, h: (h, 0)),     # w2 hidden block
            pl.BlockSpec((1, dim), lambda i, h: (0, 0)),      # b2
        ]
        out_specs = pl.BlockSpec((tm, dim), lambda i, h: (i, 0))
        scratch_shapes = (pltpu.VMEM((tm, dim), jnp.float32),)  # f32 accumulator
        kernel = functools.partial(_ffn_streaming_kernel,
                                   approximate_gelu=approximate_gelu,
                                   th=th, hidden=hidden)
        dim_sem = ("parallel", "arbitrary")

    out = pl.pallas_call(
        kernel,
        out_shape=jax.ShapeDtypeStruct((n_tok, dim), x.dtype),
        grid_spec=pltpu.PrefetchScalarGridSpec(
            num_scalar_prefetch=0,
            grid=grid,
            in_specs=in_specs,
            out_specs=out_specs,
            scratch_shapes=scratch_shapes,
        ),
        compiler_params=pltpu.CompilerParams(
            dimension_semantics=dim_sem,
            vmem_limit_bytes=vmem_limit,
        ),
        cost_estimate=cost,
    )(x2d, w1, b1_2d, w2, b2_2d)

    return out.reshape(orig_shape)


# --------------------------------------------------------------------------
# Reference + self-test
# --------------------------------------------------------------------------
def _reference_ffn(x, w1, b1, w2, b2):
    h = x @ w1 + b1
    h = 0.5 * h * (1.0 + jax.lax.erf(h * _INV_SQRT2))
    return h @ w2 + b2


if __name__ == "__main__":
    # Small, lane-dense shapes consistent with FeedForward(dim, hidden_dim).
    batch, seq, dim, hidden = 2, 8, 128, 512

    key = jax.random.PRNGKey(0)
    kx, kw1, kb1, kw2, kb2 = jax.random.split(key, 5)

    x = jax.random.normal(kx, (batch, seq, dim), dtype=jnp.float32)

    # Deterministic PyTorch-Linear-style uniform init.
    bound1 = 1.0 / (dim ** 0.5)
    bound2 = 1.0 / (hidden ** 0.5)
    w1 = jax.random.uniform(kw1, (dim, hidden), jnp.float32, -bound1, bound1)
    b1 = jax.random.uniform(kb1, (hidden,), jnp.float32, -bound1, bound1)
    w2 = jax.random.uniform(kw2, (hidden, dim), jnp.float32, -bound2, bound2)
    b2 = jax.random.uniform(kb2, (dim,), jnp.float32, -bound2, bound2)

    ref = _reference_ffn(x, w1, b1, w2, b2)

    # 1) Auto path: weights are VMEM-resident at these sizes, so the grid
    #    collapses to the token axis and no accumulator scratch is used.
    out_resident = feedforward_pallas(x, w1, b1, w2, b2, approximate_gelu=False)
    out_resident = jax.block_until_ready(out_resident)
    assert out_resident.shape == x.shape
    assert jnp.allclose(out_resident, ref, atol=1e-4, rtol=1e-4), \
        "resident path mismatch vs reference"

    # 2) Forced streaming path: two 256-wide hidden blocks exercise the f32
    #    accumulator and the init/finalize logic on the hidden axis.
    out_stream = feedforward_pallas(x, w1, b1, w2, b2, approximate_gelu=False,
                                    weights_resident=False, tile_h=256)
    out_stream = jax.block_until_ready(out_stream)
    assert jnp.allclose(out_stream, ref, atol=1e-4, rtol=1e-4), \
        "streaming path mismatch vs reference"

    print("KERNEL_OK")
</pallas_src>

<mosaic_0001>
module attributes {stable_mosaic.version = 11 : i64} {
  func.func @_ffn_resident_kernel(%arg0: i32, %arg1: memref<16x128xf32, #tpu.memory_space<vmem>>, %arg2: memref<128x512xf32, #tpu.memory_space<vmem>>, %arg3: memref<1x512xf32, #tpu.memory_space<vmem>>, %arg4: memref<512x128xf32, #tpu.memory_space<vmem>>, %arg5: memref<1x128xf32, #tpu.memory_space<vmem>>, %arg6: memref<16x128xf32, #tpu.memory_space<vmem>>) attributes {dimension_semantics = [#tpu.dimension_semantics<parallel>], iteration_bounds = array<i64: 1>, scalar_prefetch = 0 : i64, scratch_operands = 0 : i64, tpu.core_type = #tpu.core_type<tc>, window_params = [{transform_indices = @transform_0, window_bounds = array<i64: 16, 128>}, {pipeline_mode = #tpu.pipeline_mode<synchronous>, transform_indices = @transform_1, window_bounds = array<i64: 128, 512>}, {pipeline_mode = #tpu.pipeline_mode<synchronous>, transform_indices = @transform_2, window_bounds = array<i64: 1, 512>}, {pipeline_mode = #tpu.pipeline_mode<synchronous>, transform_indices = @transform_3, window_bounds = array<i64: 512, 128>}, {pipeline_mode = #tpu.pipeline_mode<synchronous>, transform_indices = @transform_4, window_bounds = array<i64: 1, 128>}, {transform_indices = @transform_5, window_bounds = array<i64: 16, 128>}]} {
    %c0 = arith.constant 0 : index
    %c0_0 = arith.constant 0 : index
    %0 = vector.load %arg1[%c0, %c0_0] : memref<16x128xf32, #tpu.memory_space<vmem>>, vector<16x128xf32>
    %c0_1 = arith.constant 0 : index
    %c0_2 = arith.constant 0 : index
    %1 = vector.load %arg2[%c0_1, %c0_2] : memref<128x512xf32, #tpu.memory_space<vmem>>, vector<128x512xf32>
    %cst = arith.constant dense<0.000000e+00> : vector<16x512xf32>
    %2 = tpu.matmul %0, %1, %cst {dimension_numbers = #tpu.dot_dimension_numbers<[1], [0], [0], [1], [0, 0, 1, 1], [], []>} : vector<16x128xf32>, vector<128x512xf32>, vector<16x512xf32> -> vector<16x512xf32>
    %c0_3 = arith.constant 0 : index
    %c0_4 = arith.constant 0 : index
    %3 = vector.load %arg3[%c0_3, %c0_4] : memref<1x512xf32, #tpu.memory_space<vmem>>, vector<1x512xf32>
    %4 = vector.broadcast %3 : vector<1x512xf32> to vector<16x512xf32>
    %5 = arith.addf %2, %4 : vector<16x512xf32>
    %cst_5 = arith.constant 5.000000e-01 : f32
    %6 = vector.broadcast %cst_5 : f32 to vector<16x512xf32>
    %7 = arith.mulf %6, %5 : vector<16x512xf32>
    %cst_6 = arith.constant 0.707106769 : f32
    %8 = vector.broadcast %cst_6 : f32 to vector<16x512xf32>
    %9 = arith.mulf %5, %8 : vector<16x512xf32>
    %10 = math.erf %9 : vector<16x512xf32>
    %cst_7 = arith.constant 1.000000e+00 : f32
    %11 = vector.broadcast %cst_7 : f32 to vector<16x512xf32>
    %12 = arith.addf %11, %10 : vector<16x512xf32>
    %13 = arith.mulf %7, %12 : vector<16x512xf32>
    %c0_8 = arith.constant 0 : index
    %c0_9 = arith.constant 0 : index
    %14 = vector.load %arg4[%c0_8, %c0_9] : memref<512x128xf32, #tpu.memory_space<vmem>>, vector<512x128xf32>
    %cst_10 = arith.constant dense<0.000000e+00> : vector<16x128xf32>
    %15 = tpu.matmul %13, %14, %cst_10 {dimension_numbers = #tpu.dot_dimension_numbers<[1], [0], [0], [1], [0, 0, 1, 1], [], []>} : vector<16x512xf32>, vector<512x128xf32>, vector<16x128xf32> -> vector<16x128xf32>
    %c0_11 = arith.constant 0 : index
    %c0_12 = arith.constant 0 : index
    %16 = vector.load %arg5[%c0_11, %c0_12] : memref<1x128xf32, #tpu.memory_space<vmem>>, vector<1x128xf32>
    %17 = vector.broadcast %16 : vector<1x128xf32> to vector<16x128xf32>
    %18 = arith.addf %15, %17 : vector<16x128xf32>
    %c0_13 = arith.constant 0 : index
    %c0_14 = arith.constant 0 : index
    %19 = vector.load %arg6[%c0_13, %c0_14] : memref<16x128xf32, #tpu.memory_space<vmem>>, vector<16x128xf32>
    tpu.vector_store %arg6[%c0_13, %c0_14], %18 {strides = array<i32>} : memref<16x128xf32, #tpu.memory_space<vmem>>, vector<16x128xf32>,
    return
  }
  func.func @transform_0(%arg0: i32) -> (i32, i32) {
    %c0_i32 = arith.constant 0 : i32
    %c0_i32_0 = arith.constant 0 : i32
    return %arg0, %c0_i32 : i32, i32
  }
  func.func @transform_1(%arg0: i32) -> (i32, i32) {
    %c0_i32 = arith.constant 0 : i32
    %c0_i32_0 = arith.constant 0 : i32
    %c0_i32_1 = arith.constant 0 : i32
    return %c0_i32, %c0_i32_0 : i32, i32
  }
  func.func @transform_2(%arg0: i32) -> (i32, i32) {
    %c0_i32 = arith.constant 0 : i32
    %c0_i32_0 = arith.constant 0 : i32
    %c0_i32_1 = arith.constant 0 : i32
    return %c0_i32, %c0_i32_0 : i32, i32
  }
  func.func @transform_3(%arg0: i32) -> (i32, i32) {
    %c0_i32 = arith.constant 0 : i32
    %c0_i32_0 = arith.constant 0 : i32
    %c0_i32_1 = arith.constant 0 : i32
    return %c0_i32, %c0_i32_0 : i32, i32
  }
  func.func @transform_4(%arg0: i32) -> (i32, i32) {
    %c0_i32 = arith.constant 0 : i32
    %c0_i32_0 = arith.constant 0 : i32
    %c0_i32_1 = arith.constant 0 : i32
    return %c0_i32, %c0_i32_0 : i32, i32
  }
  func.func @transform_5(%arg0: i32) -> (i32, i32) {
    %c0_i32 = arith.constant 0 : i32
    %c0_i32_0 = arith.constant 0 : i32
    return %arg0, %c0_i32 : i32, i32
  }
}

</mosaic_0001>

<bundles_post_ra>
// kernel: tpu_custom_call.1
= control target key start
LH: loop header
LB: loop body
LE: loop exit
PB: predicated region body
PF: predicated region fallthrough
CT: control target
= control target key end

     0   :  { %10 = vsyncpa [#allocation3], 0  ;;  %s1107_s0 = inlined_call_operand.hbm [shape: f32[16,128], index: 0, kind: input, shape index: {}]   ;;  %s1108_s1 = inlined_call_operand.hbm [shape: f32[128,512], index: 1, kind: input, shape index: {}]   ;;  %s1109_s2 = inlined_call_operand.hbm [shape: f32[1,512], index: 2, kind: input, shape index: {}]   ;;  %s1110_s3 = inlined_call_operand.hbm [shape: f32[512,128], index: 3, kind: input, shape index: {}]   ;;  %s1111_s4 = inlined_call_operand.hbm [shape: f32[1,128], index: 4, kind: input, shape index: {}]   ;;  %s1112_s5 = inlined_call_operand.hbm [shape: f32[16,128], index: 5, kind: output, shape index: {}]  }
   0x1   :  { %11 = vsyncpa [#allocation6], 0 }
   0x2   :  { %12 = vsyncpa [#allocation9], 0 }
   0x3   :  { %13 = vsyncpa [#allocation4], 0  ;;  %s981_s18 = smov [#allocation5]   ;;  %s841_s22 = scalar_lea.hbm %s1108_s1, 8192 }
   0x4   :  { %s31_s19 = sshll.u32 %s981_s18, 4  ;;  %p842_p0 = scmp.ne.s32.totalorder %s1108_s1, %s841_s22  ;;  %s32_s19 = int_to_ptr.vmem [resolvable:$true] %s31_s19 }
   0x5   :  { %p845_p1 = scmp.lt.u32.totalorder %s841_s22, %s1108_s1 }
   0x7   :  { %p847_p2 = pnand %p845_p1, %p842_p0 }
   0x9   :  { %850 = shalt.err (!%p847_p2)
}
   0xa   :  { %s851_s27 = scalar_lea.vmem %s32_s19, 8192  ;;  %p856_p4 = scmp.lt.s32.totalorder %s32_s19, %s32_s19 }
   0xb   :  { %p852_p3 = scmp.ne.s32.totalorder %s32_s19, %s851_s27  ;;  %p857_p5 = scmp.lt.s32.totalorder %s851_s27, %s851_s27 }
   0xd   :  { %p858_p6 = por %p857_p5, %p856_p4 }
   0xf   :  { %p859_p7 = pnand %p858_p6, %p852_p3 }
  0x11   :  { %862 = shalt.err (!%p859_p7)
}
  0x12   :  { %s982_s28 = smov 512   ;;  %s983_s29 = smov 32  }
  0x13   :  { %37 = dma.hbm_to_vmem [thread:$0]  %s1108_s1, 8192, %s32_s19, [#allocation6], %s982_s28, %s982_s28, %s983_s29  }
  0x14   :  { %s984_s7 = smov [#allocation8]   ;;  %s985_s9 = smov [#allocation2]  }
  0x15   :  { %s53_s8 = sshll.u32 %s984_s7, 4  ;;  %s19_s10 = sshll.u32 %s985_s9, 4  ;;  %s54_s8 = int_to_ptr.vmem [resolvable:$true] %s53_s8  ;;  %s20_s10 = int_to_ptr.vmem [resolvable:$true] %s19_s10 }
  0x16   :  { %s863_s13 = scalar_lea.hbm %s1110_s3, 8192 }
  0x17   :  { %p864_p8 = scmp.ne.s32.totalorder %s1110_s3, %s863_s13  ;;  %p867_p9 = scmp.lt.u32.totalorder %s863_s13, %s1110_s3 }
  0x19   :  { %p869_p10 = pnand %p867_p9, %p864_p8 }
  0x1b   :  { %872 = shalt.err (!%p869_p10)
}
  0x1c   :  { %s873_s1 = scalar_lea.vmem %s54_s8, 8192  ;;  %p878_p12 = scmp.lt.s32.totalorder %s54_s8, %s54_s8 }
  0x1d   :  { %p874_p11 = scmp.ne.s32.totalorder %s54_s8, %s873_s1  ;;  %p879_p13 = scmp.lt.s32.totalorder %s873_s1, %s873_s1 }
  0x1f   :  { %p880_p0 = por %p879_p13, %p878_p12 }
  0x21   :  { %p881_p1 = pnand %p880_p0, %p874_p11 }
  0x23   :  { %884 = shalt.err (!%p881_p1)
}
  0x24   :  { %s986_s18 = smov 128   ;;  %s987_s19 = smov 8  }
  0x25   :  { %59 = dma.hbm_to_vmem [thread:$0]  %s1110_s3, 8192, %s54_s8, [#allocation9], %s986_s18, %s986_s18, %s987_s19  }
  0x26   :  { %s885_s24 = scalar_lea.hbm %s1107_s0, 256 }
  0x27   :  { %p886_p2 = scmp.ne.s32.totalorder %s1107_s0, %s885_s24  ;;  %p889_p3 = scmp.lt.u32.totalorder %s885_s24, %s1107_s0 }
  0x29   :  { %p891_p4 = pnand %p889_p3, %p886_p2 }
  0x2b   :  { %894 = shalt.err (!%p891_p4)
}
  0x2c   :  { %s895_s29 = scalar_lea.vmem %s20_s10, 256  ;;  %p900_p6 = scmp.lt.s32.totalorder %s20_s10, %s20_s10 }
  0x2d   :  { %p896_p5 = scmp.ne.s32.totalorder %s20_s10, %s895_s29  ;;  %p901_p7 = scmp.lt.s32.totalorder %s895_s29, %s895_s29 }
  0x2f   :  { %p902_p8 = por %p901_p7, %p900_p6 }
  0x31   :  { %p903_p9 = pnand %p902_p8, %p896_p5 }
  0x33   :  { %906 = shalt.err (!%p903_p9)
}
  0x34   :  { %25 = dma.hbm_to_vmem [thread:$0]  %s1107_s0, 256, %s20_s10, [#allocation3], %s986_s18, %s986_s18, %s987_s19  }
  0x35   :  { %s988_s6 = smov [#allocation7]   ;;  %s989_s8 = smov [#allocation10]  }
  0x36   :  { %s44_s7 = sshll.u32 %s988_s6, 4  ;;  %s66_s9 = sshll.u32 %s989_s8, 4  ;;  %s45_s7 = int_to_ptr.vmem [resolvable:$true] %s44_s7  ;;  %s67_s9 = int_to_ptr.vmem [resolvable:$true] %s66_s9 }
  0x37   :  { %s907_s13 = scalar_lea.hbm %s1109_s2, 64 }
  0x38   :  { %p908_p10 = scmp.ne.s32.totalorder %s1109_s2, %s907_s13  ;;  %p911_p11 = scmp.lt.u32.totalorder %s907_s13, %s1109_s2 }
  0x3a   :  { %p913_p12 = pnand %p911_p11, %p908_p10 }
  0x3c   :  { %916 = shalt.err (!%p913_p12)
}
  0x3d   :  { %s917_s0 = scalar_lea.vmem %s45_s7, 64  ;;  %p922_p0 = scmp.lt.s32.totalorder %s45_s7, %s45_s7 }
  0x3e   :  { %p918_p13 = scmp.ne.s32.totalorder %s45_s7, %s917_s0  ;;  %p923_p1 = scmp.lt.s32.totalorder %s917_s0, %s917_s0 }
  0x40   :  { %p924_p2 = por %p923_p1, %p922_p0 }
  0x42   :  { %p925_p3 = pnand %p924_p2, %p918_p13 }
  0x44   :  { %928 = shalt.err (!%p925_p3)
}
  0x45   :  { %47 = dma.hbm_to_vmem [thread:$0]  %s1109_s2, 64, %s45_s7, [#allocation6]  }
  0x46   :  { %s929_s22 = scalar_lea.hbm %s1111_s4, 16 }
  0x47   :  { %p930_p4 = scmp.ne.s32.totalorder %s1111_s4, %s929_s22  ;;  %p933_p5 = scmp.lt.u32.totalorder %s929_s22, %s1111_s4 }
  0x49   :  { %p935_p6 = pnand %p933_p5, %p930_p4 }
  0x4b   :  { %938 = shalt.err (!%p935_p6)
}
  0x4c   :  { %s939_s27 = scalar_lea.vmem %s67_s9, 16  ;;  %s943_s28 = scalar_lea.vmem %s67_s9, 32 }
  0x4d   :  { %p940_p7 = scmp.ne.s32.totalorder %s67_s9, %s939_s27  ;;  %p944_p8 = scmp.lt.s32.totalorder %s67_s9, %s67_s9 }
  0x4e   :  { %p945_p9 = scmp.lt.s32.totalorder %s943_s28, %s939_s27 }
  0x50   :  { %p946_p10 = por %p945_p9, %p944_p8 }
  0x52   :  { %p947_p11 = pnand %p946_p10, %p940_p7 }
  0x54   :  { %950 = shalt.err (!%p947_p11)
}
  0x55   :  { %69 = dma.hbm_to_vmem [thread:$0]  %s1111_s4, 16, %s67_s9, [#allocation9]  }
  0x56   :  { %973 = dma.done.wait [#allocation3], 256  }
  0x57   :  { %974 = vsyncadd [#allocation3], 4294967040 }
  0x58   :  { %975 = dma.done.wait [#allocation6], 8256  }
  0x59   :  { %976 = vsyncadd [#allocation6], 4294959040 }
  0x5a   :  { %977 = dma.done.wait [#allocation9], 8208  }
  0x5b   :  { %978 = vsyncadd [#allocation9], 4294959088  ;;  %v990_v0 = vmov 0.0   ;;  %v88_v1 = vld [vmem:[#allocation5 + $0x8] sm:$0xff]  ;;  %v90_v3 = vld [vmem:[#allocation5 + $0x18] sm:$0xff]  ;;  %s991_s4 = smov [#allocation11]  }
  0x5c   :  { %237 = vmatprep.mubr.f32.mxu0 %v990_v0  ;;  %314 = vmatprep.mubr.f32.mxu1 %v990_v0  ;;  %v92_v2 = vld [vmem:[#allocation5 + $0x28] sm:$0xff]  ;;  %v94_v5 = vld [vmem:[#allocation5 + $0x38] sm:$0xff]  ;;  %v87_v6 = vld [vmem:[#allocation5] sm:$0xff]  ;;  %s595_s3 = sshll.u32 %s991_s4, 4  ;;  %s596_s3 = int_to_ptr.vmem [resolvable:$true] %s595_s3 }
  0x5d   :  { %v686_v4 = vpack.c.bf16 %v92_v2, %v88_v1  ;;  %v91_v7 = vld [vmem:[#allocation5 + $0x20] sm:$0xff]  ;;  %v718_v8 = vpack.c.bf16 %v94_v5, %v90_v3  ;;  %v89_v10 = vld [vmem:[#allocation5 + $0x10] sm:$0xff]  ;;  %v96_v12 = vld [vmem:[#allocation5 + $0x48] sm:$0xff]  ;;  %s951_s30 = scalar_lea.vmem %s596_s3, 256  ;;  %p956_p13 = scmp.lt.s32.totalorder %s596_s3, %s596_s3 }
  0x5e   :  { %v688_v9 = vpack.c.bf16 %v91_v7, %v87_v6  ;;  %v93_v11 = vld [vmem:[#allocation5 + $0x30] sm:$0xff]  ;;  %v100_v14 = vld [vmem:[#allocation5 + $0x68] sm:$0xff]  ;;  %v98_v15 = vld [vmem:[#allocation5 + $0x58] sm:$0xff]  ;;  %p952_p12 = scmp.ne.s32.totalorder %s596_s3, %s951_s30  ;;  %p957_p0 = scmp.lt.s32.totalorder %s951_s30, %s951_s30 }
  0x5f   :  { %687 = vmatprep.subr.bf16.mxu0 %v686_v4  ;;  %v720_v13 = vpack.c.bf16 %v93_v11, %v89_v10  ;;  %v102_v16 = vld [vmem:[#allocation5 + $0x78] sm:$0xff]  ;;  %719 = vmatprep.subr.bf16.mxu1 %v718_v8  ;;  %v690_v17 = vpack.c.bf16 %v100_v14, %v96_v12  ;;  %v95_v19 = vld [vmem:[#allocation5 + $0x40] sm:$0xff]  ;;  %v97_v21 = vld [vmem:[#allocation5 + $0x50] sm:$0xff] }
  0x60   :  { %689 = vmatpush1.bf16.msra.mxu0 %v688_v9  ;;  %v722_v18 = vpack.c.bf16 %v102_v16, %v98_v15  ;;  %v99_v20 = vld [vmem:[#allocation5 + $0x60] sm:$0xff]  ;;  %v101_v23 = vld [vmem:[#allocation5 + $0x70] sm:$0xff]  ;;  %v104_v24 = vld [vmem:[#allocation5 + $0x88] sm:$0xff]  ;;  %p958_p1 = por %p957_p0, %p956_p13 }
  0x61   :  { %721 = vmatpush1.bf16.msra.mxu1 %v720_v13  ;;  %v692_v22 = vpack.c.bf16 %v99_v20, %v95_v19  ;;  %v108_v25 = vld [vmem:[#allocation5 + $0xa8] sm:$0xff]  ;;  %691 = vmatprep.subr.bf16.mxu0 %v690_v17  ;;  %v724_v26 = vpack.c.bf16 %v101_v23, %v97_v21  ;;  %v106_v28 = vld [vmem:[#allocation5 + $0x98] sm:$0xff]  ;;  %v103_v30 = vld [vmem:[#allocation5 + $0x80] sm:$0xff] }
  0x62   :  { %723 = vmatprep.subr.bf16.mxu1 %v722_v18  ;;  %v694_v27 = vpack.c.bf16 %v108_v25, %v104_v24  ;;  %v110_v29 = vld [vmem:[#allocation5 + $0xb8] sm:$0xff]  ;;  %v107_v32 = vld [vmem:[#allocation5 + $0xa0] sm:$0xff]  ;;  %v105_v33 = vld [vmem:[#allocation5 + $0x90] sm:$0xff]  ;;  %p959_p2 = pnand %p958_p1, %p952_p12 }
  0x63   :  { %v726_v31 = vpack.c.bf16 %v110_v29, %v106_v28  ;;  %v109_v34 = vld [vmem:[#allocation5 + $0xb0] sm:$0xff]  ;;  %v696_v35 = vpack.c.bf16 %v107_v32, %v103_v30  ;;  %v112_v36 = vld [vmem:[#allocation5 + $0xc8] sm:$0xff]  ;;  %v114_v38 = vld [vmem:[#allocation5 + $0xd8] sm:$0xff] }
  0x64   :  { %693 = vmatpush1.bf16.msra.mxu0 %v692_v22  ;;  %v116_v37 = vld [vmem:[#allocation5 + $0xe8] sm:$0xff]  ;;  %v728_v39 = vpack.c.bf16 %v109_v34, %v105_v33  ;;  %v118_v41 = vld [vmem:[#allocation5 + $0xf8] sm:$0xff]  ;;  %v111_v42 = vld [vmem:[#allocation5 + $0xc0] sm:$0xff] }
  0x65   :  { %725 = vmatpush1.bf16.msra.mxu1 %v724_v26  ;;  %695 = vmatprep.subr.bf16.mxu0 %v694_v27  ;;  %v698_v40 = vpack.c.bf16 %v116_v37, %v112_v36  ;;  %v115_v43 = vld [vmem:[#allocation5 + $0xe0] sm:$0xff]  ;;  %v730_v44 = vpack.c.bf16 %v118_v41, %v114_v38  ;;  %v113_v45 = vld [vmem:[#allocation5 + $0xd0] sm:$0xff]  ;;  %v120_v47 = vld [vmem:[#allocation5 + $0x108] sm:$0xff] }
  0x66   :  { %727 = vmatprep.subr.bf16.mxu1 %v726_v31  ;;  %v117_v46 = vld [vmem:[#allocation5 + $0xf0] sm:$0xff]  ;;  %v124_v48 = vld [vmem:[#allocation5 + $0x128] sm:$0xff]  ;;  %v122_v49 = vld [vmem:[#allocation5 + $0x118] sm:$0xff]  ;;  %v700_v51 = vpack.c.bf16 %v115_v43, %v111_v42 }
  0x67   :  { %v126_v50 = vld [vmem:[#allocation5 + $0x138] sm:$0xff]  ;;  %v732_v52 = vpack.c.bf16 %v117_v46, %v113_v45  ;;  %v702_v53 = vpack.c.bf16 %v124_v48, %v120_v47  ;;  %v119_v54 = vld [vmem:[#allocation5 + $0x100] sm:$0xff]  ;;  %v121_v56 = vld [vmem:[#allocation5 + $0x110] sm:$0xff] }
  0x68   :  { %697 = vmatpush1.bf16.msra.mxu0 %v696_v35  ;;  %v123_v55 = vld [vmem:[#allocation5 + $0x120] sm:$0xff]  ;;  %v734_v57 = vpack.c.bf16 %v126_v50, %v122_v49  ;;  %v125_v58 = vld [vmem:[#allocation5 + $0x130] sm:$0xff]  ;;  %v128_v59 = vld [vmem:[#allocation5 + $0x148] sm:$0xff] }
  0x69   :  { %729 = vmatpush1.bf16.msra.mxu1 %v728_v39  ;;  %699 = vmatprep.subr.bf16.mxu0 %v698_v40  ;;  %v132_v60 = vld [vmem:[#allocation5 + $0x168] sm:$0xff]  ;;  %v130_v61 = vld [vmem:[#allocation5 + $0x158] sm:$0xff]  ;;  %v704_v63 = vpack.c.bf16 %v123_v55, %v119_v54  ;;  %v736_v1 = vpack.c.bf16 %v125_v58, %v121_v56  ;;  %v127_v3 = vld [vmem:[#allocation5 + $0x140] sm:$0xff] }
  0x6a   :  { %731 = vmatprep.subr.bf16.mxu1 %v730_v44  ;;  %v134_v62 = vld [vmem:[#allocation5 + $0x178] sm:$0xff]  ;;  %v706_v2 = vpack.c.bf16 %v132_v60, %v128_v59  ;;  %v131_v4 = vld [vmem:[#allocation5 + $0x160] sm:$0xff]  ;;  %v129_v5 = vld [vmem:[#allocation5 + $0x150] sm:$0xff] }
  0x6b   :  { %v738_v6 = vpack.c.bf16 %v134_v62, %v130_v61  ;;  %v133_v7 = vld [vmem:[#allocation5 + $0x170] sm:$0xff]  ;;  %v136_v8 = vld [vmem:[#allocation5 + $0x188] sm:$0xff]  ;;  %v138_v10 = vld [vmem:[#allocation5 + $0x198] sm:$0xff]  ;;  %v708_v12 = vpack.c.bf16 %v131_v4, %v127_v3 }
  0x6c   :  { %701 = vmatpush1.bf16.msra.mxu0 %v700_v51  ;;  %v140_v9 = vld [vmem:[#allocation5 + $0x1a8] sm:$0xff]  ;;  %v142_v11 = vld [vmem:[#allocation5 + $0x1b8] sm:$0xff]  ;;  %v740_v13 = vpack.c.bf16 %v133_v7, %v129_v5  ;;  %v135_v15 = vld [vmem:[#allocation5 + $0x180] sm:$0xff] }
  0x6d   :  { %733 = vmatpush1.bf16.msra.mxu1 %v732_v52  ;;  %703 = vmatprep.subr.bf16.mxu0 %v702_v53  ;;  %v710_v14 = vpack.c.bf16 %v140_v9, %v136_v8  ;;  %v139_v16 = vld [vmem:[#allocation5 + $0x1a0] sm:$0xff]  ;;  %v137_v17 = vld [vmem:[#allocation5 + $0x190] sm:$0xff]  ;;  %v742_v18 = vpack.c.bf16 %v142_v11, %v138_v10  ;;  %v144_v20 = vld [vmem:[#allocation5 + $0x1c8] sm:$0xff] }
  0x6e   :  { %735 = vmatprep.subr.bf16.mxu1 %v734_v57  ;;  %v141_v19 = vld [vmem:[#allocation5 + $0x1b0] sm:$0xff]  ;;  %v148_v21 = vld [vmem:[#allocation5 + $0x1e8] sm:$0xff]  ;;  %v146_v22 = vld [vmem:[#allocation5 + $0x1d8] sm:$0xff]  ;;  %v712_v24 = vpack.c.bf16 %v139_v16, %v135_v15 }
  0x6f   :  { %v150_v23 = vld [vmem:[#allocation5 + $0x1f8] sm:$0xff]  ;;  %v744_v25 = vpack.c.bf16 %v141_v19, %v137_v17  ;;  %v714_v26 = vpack.c.bf16 %v148_v21, %v144_v20  ;;  %v143_v27 = vld [vmem:[#allocation5 + $0x1c0] sm:$0xff]  ;;  %v145_v29 = vld [vmem:[#allocation5 + $0x1d0] sm:$0xff] }
  0x70   :  { %705 = vmatpush1.bf16.msra.mxu0 %v704_v63  ;;  %v147_v28 = vld [vmem:[#allocation5 + $0x1e0] sm:$0xff]  ;;  %v746_v30 = vpack.c.bf16 %v150_v23, %v146_v22  ;;  %v149_v31 = vld [vmem:[#allocation5 + $0x1f0] sm:$0xff]  ;;  %v86_v59 = vld [vmem:[#allocation2 + $0x8] sm:$0xff] }
  0x71   :  { %737 = vmatpush1.bf16.msra.mxu1 %v736_v1  ;;  %707 = vmatprep.subr.bf16.mxu0 %v706_v2  ;;  %v383_v32 = vld [vmem:[#allocation8 + $0x80] sm:$0xff]  ;;  %v384_v33 = vld [vmem:[#allocation8 + $0x88] sm:$0xff]  ;;  %v716_v36 = vpack.c.bf16 %v147_v28, %v143_v27  ;;  %v748_v37 = vpack.c.bf16 %v149_v31, %v145_v29  ;;  %v385_v44 = vld [vmem:[#allocation8 + $0x90] sm:$0xff] }
  0x72   :  { %739 = vmatprep.subr.bf16.mxu1 %v738_v6  ;;  %v415_v34 = vld [vmem:[#allocation8 + $0x180] sm:$0xff]  ;;  %v416_v35 = vld [vmem:[#allocation8 + $0x188] sm:$0xff]  ;;  %v750_v38 = vpack.c.bf16 %v384_v33, %v383_v32  ;;  %v386_v45 = vld [vmem:[#allocation8 + $0x98] sm:$0xff] }
  0x73   :  { %v782_v39 = vpack.c.bf16 %v416_v35, %v415_v34  ;;  %v367_v40 = vld [vmem:[#allocation8] sm:$0xff]  ;;  %v368_v41 = vld [vmem:[#allocation8 + $0x8] sm:$0xff]  ;;  %v417_v47 = vld [vmem:[#allocation8 + $0x190] sm:$0xff]  ;;  %v754_v51 = vpack.c.bf16 %v386_v45, %v385_v44 }
  0x74   :  { %709 = vmatpush1.bf16.msra.mxu0 %v708_v12  ;;  %v399_v42 = vld [vmem:[#allocation8 + $0x100] sm:$0xff]  ;;  %v400_v43 = vld [vmem:[#allocation8 + $0x108] sm:$0xff]  ;;  %v418_v48 = vld [vmem:[#allocation8 + $0x198] sm:$0xff]  ;;  %v752_v49 = vpack.c.bf16 %v368_v41, %v367_v40 }
  0x75   :  { %741 = vmatpush1.bf16.msra.mxu1 %v740_v13  ;;  %711 = vmatprep.subr.bf16.mxu0 %v710_v14  ;;  %v85_v46 = vld [vmem:[#allocation2] sm:$0xff]  ;;  %v784_v50 = vpack.c.bf16 %v400_v43, %v399_v42  ;;  %v370_v53 = vld [vmem:[#allocation8 + $0x18] sm:$0xff]  ;;  %v786_v55 = vpack.c.bf16 %v418_v48, %v417_v47  ;;  %v387_v57 = vld [vmem:[#allocation8 + $0xa0] sm:$0xff] }
  0x76   :  { %743 = vmatprep.subr.bf16.mxu1 %v742_v18  ;;  %v369_v52 = vld [vmem:[#allocation8 + $0x10] sm:$0xff]  ;;  %v402_v56 = vld [vmem:[#allocation8 + $0x118] sm:$0xff]  ;;  %v388_v58 = vld [vmem:[#allocation8 + $0xa8] sm:$0xff] }
  0x77   :  { %v401_v54 = vld [vmem:[#allocation8 + $0x110] sm:$0xff]  ;;  %v419_v60 = vld [vmem:[#allocation8 + $0x1a0] sm:$0xff]  ;;  %v420_v61 = vld [vmem:[#allocation8 + $0x1a8] sm:$0xff]  ;;  %v756_v62 = vpack.c.bf16 %v370_v53, %v369_v52  ;;  %v758_v1 = vpack.c.bf16 %v388_v58, %v387_v57 }
  0x78   :  { %713 = vmatpush1.bf16.msra.mxu0 %v712_v24  ;;  %v788_v63 = vpack.c.bf16 %v402_v56, %v401_v54  ;;  %v371_v2 = vld [vmem:[#allocation8 + $0x20] sm:$0xff]  ;;  %v372_v3 = vld [vmem:[#allocation8 + $0x28] sm:$0xff]  ;;  %v790_v4 = vpack.c.bf16 %v420_v61, %v419_v60  ;;  %v390_v9 = vld [vmem:[#allocation8 + $0xb8] sm:$0xff] }
  0x79   :  { %745 = vmatpush1.bf16.msra.mxu1 %v744_v25  ;;  %715 = vmatprep.subr.bf16.mxu0 %v714_v26  ;;  %v403_v5 = vld [vmem:[#allocation8 + $0x120] sm:$0xff]  ;;  %v404_v6 = vld [vmem:[#allocation8 + $0x128] sm:$0xff]  ;;  %v760_v7 = vpack.c.bf16 %v372_v3, %v371_v2  ;;  %v421_v10 = vld [vmem:[#allocation8 + $0x1b0] sm:$0xff] }
  0x7a   :  { %747 = vmatprep.subr.bf16.mxu1 %v746_v30  ;;  %v792_v8 = vpack.c.bf16 %v404_v6, %v403_v5  ;;  %v422_v12 = vld [vmem:[#allocation8 + $0x1b8] sm:$0xff]  ;;  %v373_v13 = vld [vmem:[#allocation8 + $0x30] sm:$0xff]  ;;  %v391_v20 = vld [vmem:[#allocation8 + $0xc0] sm:$0xff]  ;;  %v153_v5 = vlaneseq }
  0x7b   :  { %v374_v14 = vld [vmem:[#allocation8 + $0x38] sm:$0xff]  ;;  %v794_v15 = vpack.c.bf16 %v422_v12, %v421_v10  ;;  %v405_v17 = vld [vmem:[#allocation8 + $0x130] sm:$0xff]  ;;  %v392_v21 = vld [vmem:[#allocation8 + $0xc8] sm:$0xff] }
  0x7c   :  { %717 = vmatpush1.bf16.msra.mxu0 %v716_v36  ;;  %v764_v16 = vpack.c.bf16 %v374_v14, %v373_v13  ;;  %v406_v18 = vld [vmem:[#allocation8 + $0x138] sm:$0xff]  ;;  %v423_v22 = vld [vmem:[#allocation8 + $0x1c0] sm:$0xff]  ;;  %v766_v23 = vpack.c.bf16 %v392_v21, %v391_v20  ;;  %v424_v24 = vld [vmem:[#allocation8 + $0x1c8] sm:$0xff]  ;;  %v154_v6 = vshrl.u32 %v153_v5, 7 }
  0x7d   :  { %749 = vmatpush1.bf16.msra.mxu1 %v748_v37  ;;  %751 = vmatprep.subr.bf16.mxu0 %v750_v38  ;;  %v796_v19 = vpack.c.bf16 %v406_v18, %v405_v17  ;;  %v375_v25 = vld [vmem:[#allocation8 + $0x40] sm:$0xff]  ;;  %v376_v26 = vld [vmem:[#allocation8 + $0x48] sm:$0xff]  ;;  %v798_v27 = vpack.c.bf16 %v424_v24, %v423_v22  ;;  %v393_v32 = vld [vmem:[#allocation8 + $0xd0] sm:$0xff] }
  0x7e   :  { %783 = vmatprep.subr.bf16.mxu1 %v782_v39  ;;  %v768_v28 = vpack.c.bf16 %v376_v26, %v375_v25  ;;  %v407_v29 = vld [vmem:[#allocation8 + $0x140] sm:$0xff]  ;;  %v408_v30 = vld [vmem:[#allocation8 + $0x148] sm:$0xff]  ;;  %v394_v33 = vld [vmem:[#allocation8 + $0xd8] sm:$0xff]  ;;  %v167_v10 = vsub.s32 3, %v154_v6 }
  0x7f   :  { %238 = vmatmul.mubr.f32.vlgmr.msra.gmra.mrb[0].mxu0 %v85_v46  ;;  %v800_v31 = vpack.c.bf16 %v408_v30, %v407_v29  ;;  %v425_v34 = vld [vmem:[#allocation8 + $0x1d0] sm:$0xff]  ;;  %v770_v35 = vpack.c.bf16 %v394_v33, %v393_v32  ;;  %v426_v36 = vld [vmem:[#allocation8 + $0x1d8] sm:$0xff]  ;;  %v395_v44 = vld [vmem:[#allocation8 + $0xe0] sm:$0xff] }
  0x80   :  { %315 = vmatmul.mubr.f32.vlgmr.msra.gmra.mrb[0].mxu1 %v85_v46  ;;  %243 = vmatprep.mubr.f32.mxu0 %v990_v0  ;;  %v377_v37 = vld [vmem:[#allocation8 + $0x50] sm:$0xff]  ;;  %v378_v38 = vld [vmem:[#allocation8 + $0x58] sm:$0xff]  ;;  %v802_v39 = vpack.c.bf16 %v426_v36, %v425_v34  ;;  %v396_v45 = vld [vmem:[#allocation8 + $0xe8] sm:$0xff] }
  0x81   :  { %320 = vmatprep.mubr.f32.mxu1 %v990_v0  ;;  %753 = vmatpush3.bf16.msra.mxu0 %v752_v49  ;;  %v389_v0 = vld [vmem:[#allocation8 + $0xb0] sm:$0xff]  ;;  %v772_v40 = vpack.c.bf16 %v378_v38, %v377_v37  ;;  %v410_v42 = vld [vmem:[#allocation8 + $0x158] sm:$0xff]  ;;  %v427_v46 = vld [vmem:[#allocation8 + $0x1e0] sm:$0xff]  ;;  %v774_v47 = vpack.c.bf16 %v396_v45, %v395_v44 }
  0x82   :  { %785 = vmatpush3.bf16.msra.mxu1 %v784_v50  ;;  %755 = vmatprep.subr.bf16.mxu0 %v754_v51  ;;  %v762_v11 = vpack.c.bf16 %v390_v9, %v389_v0  ;;  %v409_v41 = vld [vmem:[#allocation8 + $0x150] sm:$0xff]  ;;  %v428_v48 = vld [vmem:[#allocation8 + $0x1e8] sm:$0xff]  ;;  %v379_v49 = vld [vmem:[#allocation8 + $0x60] sm:$0xff]  ;;  %v163_v0 = vsub.s32 2, %v154_v6  ;;  %v159_v9 = vsub.s32 1, %v154_v6 }
  0x83   :  { %244 = vmatmul.mubr.f32.gmra.mrb[2].mxu0 %v86_v59  ;;  %787 = vmatprep.subr.bf16.mxu1 %v786_v55  ;;  %v804_v43 = vpack.c.bf16 %v410_v42, %v409_v41  ;;  %v380_v50 = vld [vmem:[#allocation8 + $0x68] sm:$0xff]  ;;  %v806_v51 = vpack.c.bf16 %v428_v48, %v427_v46  ;;  %v411_v53 = vld [vmem:[#allocation8 + $0x160] sm:$0xff]  ;;  %v397_v56 = vld [vmem:[#allocation8 + $0xf0] sm:$0xff] }
  0x84   :  { %321 = vmatmul.mubr.f32.gmra.mrb[2].mxu1 %v86_v59  ;;  %v776_v52 = vpack.c.bf16 %v380_v50, %v379_v49  ;;  %v412_v54 = vld [vmem:[#allocation8 + $0x168] sm:$0xff]  ;;  %v398_v57 = vld [vmem:[#allocation8 + $0xf8] sm:$0xff]  ;;  %v429_v58 = vld [vmem:[#allocation8 + $0x1f0] sm:$0xff] }
  0x85   :  { %757 = vmatpush3.bf16.msra.mxu0 %v756_v62  ;;  %v808_v55 = vpack.c.bf16 %v412_v54, %v411_v53  ;;  %v778_v59 = vpack.c.bf16 %v398_v57, %v397_v56  ;;  %v430_v60 = vld [vmem:[#allocation8 + $0x1f8] sm:$0xff]  ;;  %v381_v61 = vld [vmem:[#allocation8 + $0x70] sm:$0xff] }
  0x86   :  { %789 = vmatpush3.bf16.msra.mxu1 %v788_v63  ;;  %759 = vmatprep.subr.bf16.mxu0 %v758_v1  ;;  %v382_v62 = vld [vmem:[#allocation8 + $0x78] sm:$0xff]  ;;  %v810_v63 = vpack.c.bf16 %v430_v60, %v429_v58  ;;  %v413_v2 = vld [vmem:[#allocation8 + $0x170] sm:$0xff] }
  0x87   :  { %791 = vmatprep.subr.bf16.mxu1 %v790_v4  ;;  %v780_v1 = vpack.c.bf16 %v382_v62, %v381_v61  ;;  %v414_v3 = vld [vmem:[#allocation8 + $0x178] sm:$0xff] }
  0x88   :  { %v812_v4 = vpack.c.bf16 %v414_v3, %v413_v2 }
  0x89   :  { %761 = vmatpush3.bf16.msra.mxu0 %v760_v7  ;;  %v155_v7 = vsub.s32 0, %v154_v6 }
  0x8a   :  { %793 = vmatpush3.bf16.msra.mxu1 %v792_v8  ;;  %763 = vmatprep.subr.bf16.mxu0 %v762_v11  ;;  %v151_v8 = vld [vmem:[#allocation7] sm:$0xf] }
  0x8b   :  { %795 = vmatprep.subr.bf16.mxu1 %v794_v15  ;;  %v156_v11 = vrot.slane %v151_v8, %v155_v7  ;;  %v164_v12 = vrot.slane %v151_v8, %v163_v0  ;;  %v160_v13 = vrot.slane %v151_v8, %v159_v9  ;;  %v168_v14 = vrot.slane %v151_v8, %v167_v10  ;;  %v609_v9 = vld [vmem:[#allocation10] ss:$0 sm:$0xff] }
  0x8d   :  { %765 = vmatpush3.bf16.msra.mxu0 %v764_v16 }
  0x8e   :  { %797 = vmatpush3.bf16.msra.mxu1 %v796_v19  ;;  %767 = vmatprep.subr.bf16.mxu0 %v766_v23 }
  0x8f   :  { %799 = vmatprep.subr.bf16.mxu1 %v798_v27 }
  0x91   :  { %769 = vmatpush3.bf16.msra.mxu0 %v768_v28 }
  0x92   :  { %801 = vmatpush3.bf16.msra.mxu1 %v800_v31  ;;  %771 = vmatprep.subr.bf16.mxu0 %v770_v35 }
  0x93   :  { %803 = vmatprep.subr.bf16.mxu1 %v802_v39 }
  0x95   :  { %773 = vmatpush3.bf16.msra.mxu0 %v772_v40 }
  0x96   :  { %805 = vmatpush3.bf16.msra.mxu1 %v804_v43  ;;  %775 = vmatprep.subr.bf16.mxu0 %v774_v47 }
  0x97   :  { %807 = vmatprep.subr.bf16.mxu1 %v806_v51 }
  0x99   :  { %777 = vmatpush3.bf16.msra.mxu0 %v776_v52 }
  0x9a   :  { %809 = vmatpush3.bf16.msra.mxu1 %v808_v55  ;;  %779 = vmatprep.subr.bf16.mxu0 %v778_v59 }
  0x9b   :  { %811 = vmatprep.subr.bf16.mxu1 %v810_v63 }
  0x9d   :  { %781 = vmatpush3.bf16.msra.mxu0 %v780_v1 }
  0x9e   :  { %813 = vmatpush3.bf16.msra.mxu1 %v812_v4 }
 0x152   :  { %v239_v15 = vpop.f32.mrb[0].mxu0 }
 0x153   :  { %v240_v16 = vadd.f32 %v239_v15, %v156_v11  ;;  %v316_v17 = vpop.f32.mrb[0].mxu1  ;;  %v241_v18 = vpop.f32.mrb[1].mxu0 }
 0x154   :  { %v317_v19 = vadd.f32 %v316_v17, %v164_v12  ;;  %v242_v20 = vadd.f32 %v241_v18, %v160_v13  ;;  %v318_v21 = vpop.f32.mrb[1].mxu1 }
 0x155   :  { %v335_v22 = vmul.f32 0.70710677, %v240_v16  ;;  %v319_v23 = vadd.f32 %v318_v21, %v168_v14  ;;  %v327_v47 = vmul.f32 0.5, %v240_v16 }
 0x156   :  { %v337_v24 = vmul.f32 0.70710677, %v317_v19  ;;  %v336_v25 = vmul.f32 0.70710677, %v242_v20  ;;  %v245_v27 = vpop.f32.mrb[2].mxu0  ;;  %v328_v45 = vmul.f32 0.5, %v242_v20 }
 0x157   :  { %825 = verf.f32 %v335_v22  ;;  %v338_v26 = vmul.f32 0.70710677, %v319_v23  ;;  %v322_v28 = vpop.f32.mrb[2].mxu1  ;;  %v246_v29 = vadd.f32 %v245_v27, %v156_v11  ;;  %v247_v31 = vpop.f32.mrb[3].mxu0  ;;  %v330_v48 = vmul.f32 0.5, %v319_v23 }
 0x158   :  { %827 = verf.f32 %v337_v24  ;;  %v323_v30 = vadd.f32 %v322_v28, %v164_v12  ;;  %v324_v32 = vpop.f32.mrb[3].mxu1  ;;  %v248_v33 = vadd.f32 %v247_v31, %v160_v13  ;;  %v329_v51 = vmul.f32 0.5, %v317_v19 }
 0x159   :  { %829 = verf.f32 %v336_v25  ;;  %v325_v34 = vadd.f32 %v324_v32, %v168_v14  ;;  %v339_v35 = vmul.f32 0.70710677, %v246_v29  ;;  %v331_v63 = vmul.f32 0.5, %v246_v29 }
 0x15a   :  { %831 = verf.f32 %v338_v26  ;;  %v341_v36 = vmul.f32 0.70710677, %v323_v30  ;;  %v340_v37 = vmul.f32 0.70710677, %v248_v33  ;;  %v332_v61 = vmul.f32 0.5, %v248_v33 }
 0x15b   :  { %833 = verf.f32 %v339_v35  ;;  %v342_v38 = vmul.f32 0.70710677, %v325_v34  ;;  %v334_v1 = vmul.f32 0.5, %v325_v34  ;;  %v333_v3 = vmul.f32 0.5, %v323_v30 }
 0x15c   :  { %835 = verf.f32 %v341_v36 }
 0x15d   :  { %837 = verf.f32 %v340_v37 }
 0x15e   :  { %839 = verf.f32 %v342_v38 }
 0x161   :  { %v826_v39 = vpop.eup %825 }
 0x162   :  { %v828_v40 = vpop.eup %827  ;;  %v351_v42 = vadd.f32 1.0, %v826_v39 }
 0x163   :  { %v830_v41 = vpop.eup %829  ;;  %v353_v44 = vadd.f32 1.0, %v828_v40 }
 0x164   :  { %v832_v43 = vpop.eup %831  ;;  %v352_v46 = vadd.f32 1.0, %v830_v41  ;;  %v359_v54 = vmul.f32 %v351_v42, %v327_v47 }
 0x165   :  { %v354_v49 = vadd.f32 1.0, %v832_v43  ;;  %v834_v50 = vpop.eup %833  ;;  %v361_v57 = vmul.f32 %v353_v44, %v329_v51 }
 0x166   :  { %v360_v52 = vmul.f32 %v352_v46, %v328_v45  ;;  %v836_v53 = vpop.eup %835  ;;  %v355_v58 = vadd.f32 1.0, %v834_v50 }
 0x167   :  { %v362_v55 = vmul.f32 %v354_v49, %v330_v48  ;;  %v838_v56 = vpop.eup %837  ;;  %v357_v60 = vadd.f32 1.0, %v836_v53 }
 0x168   :  { %502 = vmatprep.mubr.f32.mxu0 %v360_v52  ;;  %v840_v59 = vpop.eup %839  ;;  %v356_v62 = vadd.f32 1.0, %v838_v56  ;;  %v363_v6 = vmul.f32 %v355_v58, %v331_v63 }
 0x169   :  { %577 = vmatprep.mubr.f32.mxu1 %v362_v55  ;;  %503 = vmatmul.mubr.f32.vlgmr.msra.gmra.mrb[4].mxu0 %v359_v54  ;;  %v358_v2 = vadd.f32 1.0, %v840_v59  ;;  %v365_v7 = vmul.f32 %v357_v60, %v333_v3 }
 0x16a   :  { %578 = vmatmul.mubr.f32.vlgmr.msra.gmra.mrb[4].mxu1 %v361_v57  ;;  %v364_v4 = vmul.f32 %v356_v62, %v332_v61 }
 0x16b   :  { %v366_v5 = vmul.f32 %v358_v2, %v334_v1 }
 0x16c   :  { %507 = vmatprep.mubr.f32.mxu0 %v364_v4 }
 0x16d   :  { %582 = vmatprep.mubr.f32.mxu1 %v366_v5  ;;  %508 = vmatmul.mubr.f32.gmra.mrb[6].mxu0 %v363_v6 }
 0x16e   :  { %583 = vmatmul.mubr.f32.gmra.mrb[6].mxu1 %v365_v7 }
 0x23c   :  { %v642_v8 = vpop.f32.mrb[4].mxu0 }
 0x23d   :  { %v680_v0 = vpop.f32.mrb[4].mxu1  ;;  %v643_v10 = vpop.f32.mrb[5].mxu0 }
 0x23e   :  { %v644_v11 = vadd.f32 %v643_v10, %v642_v8  ;;  %v681_v12 = vpop.f32.mrb[5].mxu1 }
 0x23f   :  { %v682_v13 = vadd.f32 %v681_v12, %v680_v0 }
 0x240   :  { %v505_v14 = vadd.f32 %v644_v11, %v609_v9  ;;  %v645_v15 = vpop.f32.mrb[6].mxu0 }
 0x241   :  { %v683_v17 = vpop.f32.mrb[6].mxu1  ;;  %v646_v18 = vpop.f32.mrb[7].mxu0 }
 0x242   :  { %v580_v16 = vadd.f32 %v682_v13, %v505_v14  ;;  %v647_v19 = vadd.f32 %v646_v18, %v645_v15  ;;  %v684_v20 = vpop.f32.mrb[7].mxu1 }
 0x243   :  { %v685_v21 = vadd.f32 %v684_v20, %v683_v17 }
 0x244   :  { %588 = vst [vmem:[#allocation11] sm:$0xff] %v580_v16  ;;  %v510_v22 = vadd.f32 %v647_v19, %v609_v9 }
 0x246   :  { %v585_v23 = vadd.f32 %v685_v21, %v510_v22 }
 0x248   :  { %589 = vst [vmem:[#allocation11 + $0x8] sm:$0xff] %v585_v23 }
 0x249   :  { %962 = shalt.err (!%p959_p2)
}
 0x24a   :  { %s963_s8 = scalar_lea.hbm %s1112_s5, 256 }
 0x24b   :  { %p964_p3 = scmp.ne.s32.totalorder %s1112_s5, %s963_s8  ;;  %p967_p4 = scmp.lt.u32.totalorder %s963_s8, %s1112_s5 }
 0x24d   :  { %p969_p5 = pnand %p967_p4, %p964_p3 }
 0x24f   :  { %972 = shalt.err (!%p969_p5)
}
 0x250   :  { %601 = dma.vmem_to_hbm [thread:$0]  %s596_s3, 256, %s1112_s5, [#allocation4], %s986_s18, %s986_s18, %s987_s19  }
 0x251   :  { %979 = dma.done.wait [#allocation4], 256  }
 0x252   :  { %980 = vsyncadd [#allocation4], 4294967040 }
 0x253   :  { %605 = vsyncpa [#allocation3], 1 }
 0x254   :  { %606 = vsyncpa [#allocation6], 1 }
 0x255   :  { %607 = vsyncpa [#allocation9], 1 }
 0x256   :  { %608 = vsyncpa [#allocation4], 1 }

</bundles_post_ra>
